<compile_context>
chip_gen: v7x
topology: tpu7x:2x2x1
jax: 0.10.0
libtpu: 0.0.40
codegen_flags: <defaults>
</compile_context>

<pallas_src>
import functools

import jax
import jax.numpy as jnp
from jax import lax
from jax.experimental import pallas as pl
from jax.experimental.pallas import tpu as pltpu


def _mlp_kernel(seed_ref, x_ref, w_ref, b_ref, o_ref, *,
                dropout_r, use_relu, n_cols):
    # Linear: y = x @ W^T + b, with W kept in its native (out, in) layout.
    # Contract x's last dim with w's last dim -> (tm, tn) f32 accumulator.
    y = lax.dot_general(
        x_ref[...], w_ref[...],
        dimension_numbers=(((1,), (1,)), ((), ())),
        preferred_element_type=jnp.float32,
    )
    y = y + b_ref[...].astype(jnp.float32)          # (1, tn) broadcasts over rows

    if use_relu:
        y = jnp.maximum(y, 0.0)

    if dropout_r > 0.0:
        # Train-mode inverted dropout.  Counter-based PRNG: hash the global
        # element index with splitmix32 and keep iff bits >= p * 2^32.
        tm_b, tn_b = y.shape
        j = pl.program_id(0)                        # N-tile index (outer)
        i = pl.program_id(1)                        # M-tile index (inner)
        row = (lax.broadcasted_iota(jnp.int32, (tm_b, tn_b), 0)
               + i * tm_b).astype(jnp.uint32)
        col = (lax.broadcasted_iota(jnp.int32, (tm_b, tn_b), 1)
               + j * tn_b).astype(jnp.uint32)
        idx = row * jnp.uint32(n_cols) + col

        seed = seed_ref[0].astype(jnp.uint32)
        h = idx * jnp.uint32(0x9E3779B1) + seed
        h = h ^ (h >> jnp.uint32(16))
        h = h * jnp.uint32(0x85EBCA6B)
        h = h ^ (h >> jnp.uint32(13))
        h = h * jnp.uint32(0xC2B2AE35)
        h = h ^ (h >> jnp.uint32(16))

        thresh = jnp.uint32(min(int(round(dropout_r * (2 ** 32))), 2 ** 32 - 1))
        keep = h >= thresh
        y = jnp.where(keep, y * jnp.float32(1.0 / (1.0 - dropout_r)),
                      jnp.float32(0.0))

    o_ref[...] = y.astype(o_ref.dtype)


def mlp_forward(x, weight, bias, seed, *, dropout_r, use_relu,
                tm_target=256, tn_target=256):
    """x: (..., in_size); weight: (out_size, in_size); bias: (out_size,)."""
    lead = x.shape[:-1]
    K = x.shape[-1]
    N = weight.shape[0]

    x2 = x.reshape(-1, K)                           # (M, K)
    M = x2.shape[0]
    b2 = bias.reshape(1, N)                         # (1, N)

    # Tile sizes: full dim when small, otherwise 256 (8/128-aligned, fits the
    # v7x 32 MiB scoped-VMEM default with double buffering; fine on v6e/v5e).
    tm = M if M <= tm_target else tm_target
    tn = N if N <= tn_target else tn_target

    # N-tiles outer, M-tiles inner: the weight block index only depends on j,
    # so it stays resident in VMEM while we stream M-tiles of activations.
    grid = (pl.cdiv(N, tn), pl.cdiv(M, tm))

    kernel = functools.partial(
        _mlp_kernel,
        dropout_r=float(dropout_r),
        use_relu=bool(use_relu),
        n_cols=N,
    )

    itemsize = jnp.dtype(x.dtype).itemsize
    cost = pl.CostEstimate(
        flops=2 * M * N * K,
        transcendentals=0,
        bytes_accessed=(M * K + N * K + N + M * N) * itemsize,
    )

    out2 = pl.pallas_call(
        kernel,
        out_shape=jax.ShapeDtypeStruct((M, N), x.dtype),
        grid_spec=pltpu.PrefetchScalarGridSpec(
            num_scalar_prefetch=1,                  # seed -> SMEM
            grid=grid,
            in_specs=[
                pl.BlockSpec((tm, K), lambda j, i, s: (i, 0)),   # activations
                pl.BlockSpec((tn, K), lambda j, i, s: (j, 0)),   # weight (resident over i)
                pl.BlockSpec((1, tn), lambda j, i, s: (0, j)),   # bias
            ],
            out_specs=pl.BlockSpec((tm, tn), lambda j, i, s: (i, j)),
        ),
        compiler_params=pltpu.CompilerParams(
            dimension_semantics=("parallel", "parallel"),
        ),
        cost_estimate=cost,
    )(seed, x2, weight, b2)

    return out2.reshape(*lead, N)


if __name__ == "__main__":
    # Small shapes consistent with MLP(in_size, out_size, dropout_r, use_relu)
    batch, seq = 2, 8
    in_size, out_size = 32, 64
    dropout_r, use_relu = 0.1, True

    key = jax.random.PRNGKey(0)
    kx, kw, kb = jax.random.split(key, 3)

    x = jax.random.normal(kx, (batch, seq, in_size), dtype=jnp.float32)

    # Deterministic init mimicking nn.Linear default: U(-1/sqrt(in), 1/sqrt(in))
    bound = 1.0 / (in_size ** 0.5)
    weight = jax.random.uniform(kw, (out_size, in_size), jnp.float32, -bound, bound)
    bias = jax.random.uniform(kb, (out_size,), jnp.float32, -bound, bound)

    seed = jnp.array([42], dtype=jnp.int32)

    # 1) No-dropout path must match Linear(+ReLU) exactly.
    ref = jnp.maximum(x @ weight.T + bias, 0.0)
    out_nodrop = jax.block_until_ready(
        mlp_forward(x, weight, bias, seed, dropout_r=0.0, use_relu=use_relu))
    assert out_nodrop.shape == (batch, seq, out_size)
    assert bool(jnp.allclose(out_nodrop, ref, atol=1e-5, rtol=1e-5))

    # 2) Dropout path: surviving entries equal relu(linear)/(1-p); drop rate sane.
    out = jax.block_until_ready(
        mlp_forward(x, weight, bias, seed, dropout_r=dropout_r, use_relu=use_relu))
    scaled_ref = ref / (1.0 - dropout_r)
    nz = out != 0.0
    assert bool(jnp.allclose(jnp.where(nz, out, 0.0),
                             jnp.where(nz, scaled_ref, 0.0),
                             atol=1e-5, rtol=1e-5))
    pos = ref > 0.0
    n_pos = int(jnp.sum(pos))
    n_dropped = int(jnp.sum(jnp.logical_and(pos, out == 0.0)))
    frac = n_dropped / max(n_pos, 1)
    assert 0.01 < frac < 0.35, f"dropout fraction {frac} implausible"

    print("KERNEL_OK")
</pallas_src>

<mosaic_0001>
module attributes {stable_mosaic.version = 11 : i64} {
  func.func @_mlp_kernel(%arg0: i32, %arg1: i32, %arg2: memref<1xi32, #tpu.memory_space<smem>>, %arg3: memref<16x32xf32, #tpu.memory_space<vmem>>, %arg4: memref<64x32xf32, #tpu.memory_space<vmem>>, %arg5: memref<1x64xf32, #tpu.memory_space<vmem>>, %arg6: memref<16x64xf32, #tpu.memory_space<vmem>>) attributes {dimension_semantics = [#tpu.dimension_semantics<parallel>, #tpu.dimension_semantics<parallel>], iteration_bounds = array<i64: 1, 1>, scalar_prefetch = 1 : i64, scratch_operands = 0 : i64, tpu.core_type = #tpu.core_type<tc>, window_params = [{transform_indices = @transform_0, window_bounds = array<i64: 16, 32>}, {transform_indices = @transform_1, window_bounds = array<i64: 64, 32>}, {transform_indices = @transform_2, window_bounds = array<i64: 1, 64>}, {transform_indices = @transform_3, window_bounds = array<i64: 16, 64>}]} {
    %c0 = arith.constant 0 : index
    %c0_0 = arith.constant 0 : index
    %0 = vector.load %arg3[%c0, %c0_0] : memref<16x32xf32, #tpu.memory_space<vmem>>, vector<16x32xf32>
    %c0_1 = arith.constant 0 : index
    %c0_2 = arith.constant 0 : index
    %1 = vector.load %arg4[%c0_1, %c0_2] : memref<64x32xf32, #tpu.memory_space<vmem>>, vector<64x32xf32>
    %cst = arith.constant dense<0.000000e+00> : vector<16x64xf32>
    %2 = tpu.matmul %0, %1, %cst {dimension_numbers = #tpu.dot_dimension_numbers<[1], [1], [0], [0], [0, 0, 1, 0], [], []>} : vector<16x32xf32>, vector<64x32xf32>, vector<16x64xf32> -> vector<16x64xf32>
    %c0_3 = arith.constant 0 : index
    %c0_4 = arith.constant 0 : index
    %3 = vector.load %arg5[%c0_3, %c0_4] : memref<1x64xf32, #tpu.memory_space<vmem>>, vector<1x64xf32>
    %4 = vector.broadcast %3 : vector<1x64xf32> to vector<16x64xf32>
    %5 = arith.addf %2, %4 : vector<16x64xf32>
    %cst_5 = arith.constant 0.000000e+00 : f32
    %6 = vector.broadcast %cst_5 : f32 to vector<16x64xf32>
    %7 = arith.maximumf %5, %6 : vector<16x64xf32>
    %c0_6 = arith.constant 0 : index
    %c0_7 = arith.constant 0 : index
    %8 = vector.load %arg6[%c0_6, %c0_7] : memref<16x64xf32, #tpu.memory_space<vmem>>, vector<16x64xf32>
    tpu.vector_store %arg6[%c0_6, %c0_7], %7 {strides = array<i32>} : memref<16x64xf32, #tpu.memory_space<vmem>>, vector<16x64xf32>,
    return
  }
  func.func @transform_0(%arg0: i32, %arg1: i32, %arg2: memref<1xi32, #tpu.memory_space<smem>>) -> (i32, i32) {
    %c0_i32 = arith.constant 0 : i32
    %c0_i32_0 = arith.constant 0 : i32
    return %arg1, %c0_i32 : i32, i32
  }
  func.func @transform_1(%arg0: i32, %arg1: i32, %arg2: memref<1xi32, #tpu.memory_space<smem>>) -> (i32, i32) {
    %c0_i32 = arith.constant 0 : i32
    %c0_i32_0 = arith.constant 0 : i32
    return %arg0, %c0_i32 : i32, i32
  }
  func.func @transform_2(%arg0: i32, %arg1: i32, %arg2: memref<1xi32, #tpu.memory_space<smem>>) -> (i32, i32) {
    %c0_i32 = arith.constant 0 : i32
    %c0_i32_0 = arith.constant 0 : i32
    return %c0_i32, %arg0 : i32, i32
  }
  func.func @transform_3(%arg0: i32, %arg1: i32, %arg2: memref<1xi32, #tpu.memory_space<smem>>) -> (i32, i32) {
    %c0_i32 = arith.constant 0 : i32
    return %arg1, %arg0 : i32, i32
  }
}

</mosaic_0001>

<bundles_post_ra>
// kernel: tpu_custom_call.1
= control target key start
LH: loop header
LB: loop body
LE: loop exit
PB: predicated region body
PF: predicated region fallthrough
CT: control target
= control target key end

     0   :  { %vm34_vm0 = vcmask 261120   ;;  %s349_s0 = inlined_call_operand.<no memory space> [shape: s32[1], index: 0, kind: input, shape index: {}]   ;;  %s350_s1 = inlined_call_operand.vmem [shape: f32[16,32], index: 1, kind: input, shape index: {}]   ;;  %s351_s2 = inlined_call_operand.vmem [shape: f32[64,32], index: 2, kind: input, shape index: {}]   ;;  %s352_s3 = inlined_call_operand.vmem [shape: f32[1,64], index: 3, kind: input, shape index: {}]   ;;  %s353_s4 = inlined_call_operand.hbm [shape: f32[16,64], index: 4, kind: output, shape index: {}]  }
   0x1   :  { %v19_v0 = vld [vmem:[%s351_s2] sm:$0xff]  ;;  %v20_v1 = vld [vmem:[%s351_s2 + $0x8] sm:$0xff]  ;;  %v21_v2 = vld [vmem:[%s351_s2 + $0x10] sm:$0xff] }
   0x2   :  { %v201_v3 = vpack.c.bf16 %v20_v1, %v19_v0  ;;  %vm291_vm1 = vmpackc.low %vm34_vm0, %vm34_vm0  ;;  %v22_v5 = vld [vmem:[%s351_s2 + $0x18] sm:$0xff]  ;;  %v17_v7 = vld [vmem:[%s350_s1] sm:$0xff] }
   0x3   :  { %v207_v6 = vpack.c.bf16 %v22_v5, %v21_v2 }
   0x4   :  { %203 = vmatprep.subr.msk.bf16.mxu0 %vm291_vm1, %v201_v3 }
   0x5   :  { %10 = vsyncpa [#allocation5], 0  ;;  %206 = vmatpush3.bf16.xpose.msk.msra.mxu0 %vm291_vm1, %v201_v3  ;;  %198 = vmatprep.mubr.msk.f32.mxu0 %vm34_vm0, %v17_v7  ;;  %v23_v8 = vld [vmem:[%s351_s2 + $0x20] sm:$0xff]  ;;  %v24_v9 = vld [vmem:[%s351_s2 + $0x28] sm:$0xff]  ;;  %vm142_vm2 = vcmask 523264  }
   0x6   :  { %209 = vmatprep.subr.msk.bf16.mxu0 %vm291_vm1, %v207_v6  ;;  %v213_v10 = vpack.c.bf16 %v24_v9, %v23_v8  ;;  %v25_v11 = vld [vmem:[%s351_s2 + $0x30] sm:$0xff]  ;;  %v26_v12 = vld [vmem:[%s351_s2 + $0x38] sm:$0xff]  ;;  %v18_v14 = vld [vmem:[%s350_s1 + $0x8] sm:$0xff]  ;;  %s252_s2 = smov [#allocation4]  }
   0x7   :  { %v219_v13 = vpack.c.bf16 %v26_v12, %v25_v11  ;;  %v161_v15 = vld [vmem:[%s352_s3] ss:$0 sm:$0xff]  ;;  %s150_s10 = sshll.u32 %s252_s2, 4  ;;  %s151_s10 = int_to_ptr.vmem [resolvable:$true] %s150_s10 }
   0x8   :  { %s228_s11 = scalar_lea.vmem %s151_s10, 256  ;;  %p233_p1 = scmp.lt.s32.totalorder %s151_s10, %s151_s10 }
   0x9   :  { %p229_p0 = scmp.ne.s32.totalorder %s151_s10, %s228_s11  ;;  %p234_p2 = scmp.lt.s32.totalorder %s228_s11, %s228_s11 }
   0xb   :  { %p235_p3 = por %p234_p2, %p233_p1 }
   0xd   :  { %212 = vmatpush3.bf16.xpose.msk.msra.mxu0 %vm291_vm1, %v207_v6  ;;  %p236_p4 = pnand %p235_p3, %p229_p0 }
   0xe   :  { %215 = vmatprep.subr.msk.bf16.mxu0 %vm291_vm1, %v213_v10 }
  0x15   :  { %218 = vmatpush3.bf16.xpose.msk.msra.mxu0 %vm291_vm1, %v213_v10 }
  0x16   :  { %221 = vmatprep.subr.msk.bf16.mxu0 %vm291_vm1, %v219_v13 }
  0x1d   :  { %224 = vmatpush3.bf16.xpose.msk.msra.mxu0 %vm291_vm1, %v219_v13 }
  0x24   :  { %199 = vmatmul.mubr.msk.f32.vlgmr.msra.gmra.mrb[0].mxu0 %vm34_vm0, %v18_v14 }
  0xf7   :  { %v200_v16 = vpop.f32.mrb[0].mxu0 }
  0xf8   :  { %v137_v17 = vadd.f32 %v200_v16, %v161_v15  ;;  %v131_v18 = vpop.f32.mrb[1].mxu0 }
  0xf9   :  { %v132_v19 = vadd.f32 %v161_v15, %v131_v18 }
  0xfa   :  { %v141_v20 = vmax.f32 %v137_v17, 0.0 }
  0xfb   :  { %v140_v21 = vmax.f32 %v132_v19, 0.0 }
  0xfc   :  { %144 = vst.msk [vmem:[#allocation4 + $0x8] sm:$0xff] %vm142_vm2, %v141_v20 }
  0xfd   :  { %143 = vst.msk [vmem:[#allocation4] sm:$0xff] %vm142_vm2, %v140_v21 }
  0xfe   :  { %239 = shalt.err (!%p236_p4)
}
  0xff   :  { %s240_s12 = scalar_lea.hbm %s353_s4, 256 }
 0x100   :  { %p241_p5 = scmp.ne.s32.totalorder %s353_s4, %s240_s12  ;;  %p244_p6 = scmp.lt.u32.totalorder %s240_s12, %s353_s4 }
 0x102   :  { %p246_p7 = pnand %p244_p6, %p241_p5 }
 0x104   :  { %249 = shalt.err (!%p246_p7)
}
 0x105   :  { %s253_s17 = smov 128   ;;  %s254_s18 = smov 8  }
 0x106   :  { %156 = dma.vmem_to_hbm [thread:$0]  %s151_s10, 256, %s353_s4, [#allocation5], %s253_s17, %s253_s17, %s254_s18  }
 0x107   :  { %250 = dma.done.wait [#allocation5], 256  }
 0x108   :  { %251 = vsyncadd [#allocation5], 4294967040 }
 0x109   :  { %160 = vsyncpa [#allocation5], 1 }

</bundles_post_ra>
